<compile_context>
chip_gen: v6e
topology: v6e:2x2x1
jax: 0.10.0
libtpu: 0.0.40
codegen_flags: <defaults>
</compile_context>

<pallas_src>
import jax
import jax.numpy as jnp
from jax.experimental import pallas as pl
from jax.experimental.pallas import tpu as pltpu


# ----------------------------- helpers ------------------------------------ #

def _round_up(x: int, m: int) -> int:
    return ((x + m - 1) // m) * m


def _cdiv(a: int, b: int) -> int:
    return (a + b - 1) // b


def _vmem_capacity_bytes() -> int:
    try:
        info = pltpu.get_tpu_info()
        cap = getattr(info, "vmem_capacity_bytes", None)
        if cap:
            return int(cap)
    except Exception:
        pass
    return 64 * 1024 * 1024  # conservative default (v7x per-core VMEM)


def _sublane(itemsize: int) -> int:
    # dtype-aware second-to-last-dim granularity: 8 (f32), 16 (bf16), 32 (int8)
    return max(8, 32 // itemsize)


def _pick_tile(dim: int, tmax: int, align: int) -> int:
    """Waste-minimizing tile size.  Full-dim block if it fits (always legal)."""
    if dim <= tmax:
        return dim
    n = _cdiv(dim, tmax)
    return _round_up(_cdiv(dim, n), align)


def _choose_k_tiling(in_features: int, tk_max: int):
    """Return (tk, in_p, num_k), padding K only when unavoidable."""
    tk_max = max(128, tk_max - tk_max % 128)
    if in_features <= tk_max:
        return in_features, in_features, 1          # single K step, no padding
    if in_features % 128 == 0:
        for cand in range(tk_max, 127, -128):        # largest 128-multiple divisor
            if in_features % cand == 0:
                return cand, in_features, in_features // cand
    # Awkward size: pad K (zero x columns / zero V^T rows -> numerically exact).
    in_p0 = _round_up(in_features, 128)
    n = _cdiv(in_p0, tk_max)
    tk = _round_up(_cdiv(in_p0, n), 128)
    in_p = _round_up(in_features, tk)
    return tk, in_p, in_p // tk


# ----------------------------- kernels ------------------------------------ #

def _fused_kernel(has_bias: bool, num_k: int, tk: int):
    def kernel(*refs):
        if has_bias:
            x_ref, vt_ref, ut_ref, b_ref = refs[:4]
            rest = refs[4:]
        else:
            x_ref, vt_ref, ut_ref = refs[:3]
            b_ref = None
            rest = refs[3:]
        o_ref = rest[0]

        def epilogue(acc_f32):
            # Epilogue: (tb, rank_p) @ (rank_p, out) on the MXU, f32 bias add,
            # single downcast to the output dtype.
            y = jnp.dot(acc_f32.astype(ut_ref.dtype), ut_ref[...],
                        preferred_element_type=jnp.float32)
            if has_bias:
                y = y + b_ref[...]                   # bias kept in f32
            o_ref[...] = y.astype(o_ref.dtype)

        if num_k == 1:
            acc = jnp.dot(x_ref[...], vt_ref[...],
                          preferred_element_type=jnp.float32)
            epilogue(acc)
        else:
            acc_ref = rest[1]
            k = pl.program_id(1)
            off = pl.multiple_of(k * tk, tk)
            part = jnp.dot(x_ref[...], vt_ref[pl.ds(off, tk), :],
                           preferred_element_type=jnp.float32)

            @pl.when(k == 0)
            def _():
                acc_ref[...] = part                   # no zero-init pass

            @pl.when(k > 0)
            def _():
                acc_ref[...] += part

            @pl.when(k == num_k - 1)
            def _():
                epilogue(acc_ref[...])

    return kernel


def _stage1_kernel(num_k: int, tk: int):
    # T = x @ (V^T * S), accumulated directly into the resident f32 output block.
    def kernel(x_ref, vt_ref, t_ref):
        if num_k == 1:
            t_ref[...] = jnp.dot(x_ref[...], vt_ref[...],
                                 preferred_element_type=jnp.float32)
        else:
            k = pl.program_id(1)
            off = pl.multiple_of(k * tk, tk)
            part = jnp.dot(x_ref[...], vt_ref[pl.ds(off, tk), :],
                           preferred_element_type=jnp.float32)

            @pl.when(k == 0)
            def _():
                t_ref[...] = part

            @pl.when(k > 0)
            def _():
                t_ref[...] += part

    return kernel


def _stage2_kernel(has_bias: bool):
    # Y = T @ U^T + bias, tiled over (batch, out).
    def kernel(*refs):
        if has_bias:
            t_ref, ut_ref, b_ref, o_ref = refs
        else:
            t_ref, ut_ref, o_ref = refs
            b_ref = None
        y = jnp.dot(t_ref[...].astype(ut_ref.dtype), ut_ref[...],
                    preferred_element_type=jnp.float32)
        if has_bias:
            y = y + b_ref[...]
        o_ref[...] = y.astype(o_ref.dtype)

    return kernel


# ----------------------------- wrapper ------------------------------------ #

def low_rank_linear(x, U, S, V, bias=None, *,
                    tb_max=512, tk_max=2048, tn_max=2048,
                    force_two_stage=False):
    """y = ((x @ V.T) * S) @ U.T + bias via Pallas TPU kernels.

    x:    (batch, in_features)
    U:    (out_features, rank)
    S:    (rank,)
    V:    (rank, in_features)
    bias: (out_features,) or None
    """
    batch, in_features = x.shape
    out_features, rank = U.shape
    dtype = x.dtype
    itemsize = jnp.dtype(dtype).itemsize
    sublane = _sublane(itemsize)
    has_bias = bias is not None

    # --- plain-JAX glue: fold S into V^T, transpose U, pad rank to a lane
    #     multiple (zero-padding is numerically exact). Bias stays in f32. ---
    rank_p = _round_up(rank, 128)
    vt = (V.astype(jnp.float32).T * S.astype(jnp.float32)[None, :]).astype(dtype)
    vt = jnp.pad(vt, ((0, 0), (0, rank_p - rank)))          # (in, rank_p)
    ut = jnp.pad(U.T.astype(dtype), ((0, rank_p - rank), (0, 0)))  # (rank_p, out)
    b2d = bias.astype(jnp.float32).reshape(1, out_features) if has_bias else None

    # --- per-generation VMEM budget. ---
    vmem_cap = _vmem_capacity_bytes()
    budget = int(0.65 * vmem_cap)
    headroom = 4 * 1024 * 1024

    def _vmem_limit(need):
        return int(min(0.9 * vmem_cap, max(need + headroom, 32 << 20)))

    # --- fused tiling: grid = (batch tiles, K tiles); shrink to fit budget. ---
    tb = _pick_tile(batch, tb_max, sublane)
    cur_tk_max = tk_max
    while True:
        tk, in_p, num_k = _choose_k_tiling(in_features, cur_tk_max)
        need = (2 * (tb * tk + in_p * rank_p + rank_p * out_features
                     + tb * out_features) * itemsize
                + 2 * out_features * 4
                + tb * rank_p * 4)
        if need <= budget:
            break
        if cur_tk_max > 512:
            cur_tk_max //= 2
        elif tb > sublane:
            tb = max(sublane, _round_up(tb // 2, sublane))
        else:
            break

    use_two_stage = force_two_stage or need > budget

    if not use_two_stage:
        x_p, vt_p = x, vt
        if in_p != in_features:                       # rare: awkward K only
            x_p = jnp.pad(x, ((0, 0), (0, in_p - in_features)))
            vt_p = jnp.pad(vt, ((0, in_p - in_features), (0, 0)))

        grid = (_cdiv(batch, tb), num_k)
        in_specs = [
            pl.BlockSpec((tb, tk), lambda i, k: (i, k)),            # x stream
            pl.BlockSpec((in_p, rank_p), lambda i, k: (0, 0)),       # resident V^T*S
            pl.BlockSpec((rank_p, out_features), lambda i, k: (0, 0)),  # resident U^T
        ]
        inputs = [x_p, vt_p, ut]
        if has_bias:
            in_specs.append(pl.BlockSpec((1, out_features), lambda i, k: (0, 0)))
            inputs.append(b2d)
        scratch = [] if num_k == 1 else [pltpu.VMEM((tb, rank_p), jnp.float32)]

        cost = pl.CostEstimate(
            flops=2 * batch * in_features * rank + 2 * batch * rank * out_features,
            transcendentals=0,
            bytes_accessed=itemsize * (batch * in_features + vt_p.size + ut.size
                                       + batch * out_features)
            + (4 * out_features if has_bias else 0),
        )

        return pl.pallas_call(
            _fused_kernel(has_bias, num_k, tk),
            out_shape=jax.ShapeDtypeStruct((batch, out_features), dtype),
            grid_spec=pltpu.PrefetchScalarGridSpec(
                num_scalar_prefetch=0,
                grid=grid,
                in_specs=in_specs,
                out_specs=pl.BlockSpec((tb, out_features), lambda i, k: (i, 0)),
                scratch_shapes=scratch,
            ),
            compiler_params=pltpu.CompilerParams(
                dimension_semantics=("parallel", "arbitrary"),
                vmem_limit_bytes=_vmem_limit(need),
            ),
            cost_estimate=cost,
        )(*inputs)

    # ------ two-stage fallback: out_features too large to keep resident ------ #
    # Stage 1: T = x @ (V^T * S)  -> (batch, rank_p) f32; x streamed once.
    tb1 = _pick_tile(batch, tb_max, sublane)
    cur_tk_max = tk_max
    while True:
        tk, in_p, num_k = _choose_k_tiling(in_features, cur_tk_max)
        need1 = 2 * (tb1 * tk + in_p * rank_p) * itemsize + 2 * tb1 * rank_p * 4
        if need1 <= budget or cur_tk_max <= 512:
            break
        cur_tk_max //= 2

    x_p, vt_p = x, vt
    if in_p != in_features:
        x_p = jnp.pad(x, ((0, 0), (0, in_p - in_features)))
        vt_p = jnp.pad(vt, ((0, in_p - in_features), (0, 0)))

    t = pl.pallas_call(
        _stage1_kernel(num_k, tk),
        out_shape=jax.ShapeDtypeStruct((batch, rank_p), jnp.float32),
        grid_spec=pltpu.PrefetchScalarGridSpec(
            num_scalar_prefetch=0,
            grid=(_cdiv(batch, tb1), num_k),
            in_specs=[
                pl.BlockSpec((tb1, tk), lambda i, k: (i, k)),
                pl.BlockSpec((in_p, rank_p), lambda i, k: (0, 0)),
            ],
            out_specs=pl.BlockSpec((tb1, rank_p), lambda i, k: (i, 0)),
        ),
        compiler_params=pltpu.CompilerParams(
            dimension_semantics=("parallel", "arbitrary"),
            vmem_limit_bytes=_vmem_limit(need1),
        ),
    )(x_p, vt_p)

    # Stage 2: Y = T @ U^T + bias, tiled over (batch, out).
    tn = _pick_tile(out_features, tn_max, 128)
    tb2 = _pick_tile(batch, tb_max, sublane)
    while True:
        need2 = 2 * (tb2 * rank_p * 4 + rank_p * tn * itemsize
                     + tb2 * tn * itemsize + tn * 4)
        if need2 <= budget:
            break
        if tn > 128:
            tn = max(128, _round_up(tn // 2, 128))
        elif tb2 > sublane:
            tb2 = max(sublane, _round_up(tb2 // 2, sublane))
        else:
            break

    in_specs2 = [
        pl.BlockSpec((tb2, rank_p), lambda i, j: (i, 0)),
        pl.BlockSpec((rank_p, tn), lambda i, j: (0, j)),
    ]
    inputs2 = [t, ut]
    if has_bias:
        in_specs2.append(pl.BlockSpec((1, tn), lambda i, j: (0, j)))
        inputs2.append(b2d)

    return pl.pallas_call(
        _stage2_kernel(has_bias),
        out_shape=jax.ShapeDtypeStruct((batch, out_features), dtype),
        grid_spec=pltpu.PrefetchScalarGridSpec(
            num_scalar_prefetch=0,
            grid=(_cdiv(batch, tb2), _cdiv(out_features, tn)),
            in_specs=in_specs2,
            out_specs=pl.BlockSpec((tb2, tn), lambda i, j: (i, j)),
        ),
        compiler_params=pltpu.CompilerParams(
            dimension_semantics=("parallel", "parallel"),
            vmem_limit_bytes=_vmem_limit(need2),
        ),
    )(*inputs2)


# ----------------------------- reference / test ---------------------------- #

def low_rank_linear_ref(x, U, S, V, bias=None):
    """Pure-JAX reference mirroring the PyTorch forward (full f32 matmuls)."""
    hp = jax.lax.Precision.HIGHEST
    r = jnp.dot(x, V.T, precision=hp)
    r = r * S
    r = jnp.dot(r, U.T, precision=hp)
    if bias is not None:
        r = r + bias
    return r


def _max_rel_err(a, b):
    return float(jnp.max(jnp.abs(a - b)) / (jnp.max(jnp.abs(b)) + 1e-6))


if __name__ == "__main__":
    key = jax.random.PRNGKey(0)
    kx, ku, kv, ks, kb = jax.random.split(key, 5)

    # --- small shapes consistent with the module (single-tile fused path). ---
    batch, in_f, out_f, rank = 8, 32, 16, 8
    x = jax.random.normal(kx, (batch, in_f), dtype=jnp.float32)
    U = jax.random.normal(ku, (out_f, rank), dtype=jnp.float32)
    S = jax.random.uniform(ks, (rank,), dtype=jnp.float32, minval=0.5, maxval=1.5)
    V = jax.random.normal(kv, (rank, in_f), dtype=jnp.float32)
    bias = jax.random.normal(kb, (out_f,), dtype=jnp.float32)

    out = jax.block_until_ready(low_rank_linear(x, U, S, V, bias))
    ref = low_rank_linear_ref(x, U, S, V, bias)
    assert out.shape == (batch, out_f)
    assert jnp.allclose(out, ref, atol=1e-3, rtol=1e-3), "mismatch (small, bias)"

    out_nb = jax.block_until_ready(low_rank_linear(x, U, S, V, None))
    ref_nb = low_rank_linear_ref(x, U, S, V, None)
    assert jnp.allclose(out_nb, ref_nb, atol=1e-3, rtol=1e-3), "mismatch (no bias)"

    # --- multi-tile fused path: multiple batch tiles (ragged edge block) and
    #     multiple K steps, exercised via small tile caps. ---
    b2, i2, o2, r2 = 200, 640, 384, 8
    k1, k2, k3, k4, k5 = jax.random.split(jax.random.PRNGKey(1), 5)
    x2 = jax.random.normal(k1, (b2, i2), dtype=jnp.float32)
    U2 = jax.random.normal(k2, (o2, r2), dtype=jnp.float32)
    S2 = jax.random.uniform(k4, (r2,), dtype=jnp.float32, minval=0.5, maxval=2.0)
    V2 = jax.random.normal(k3, (r2, i2), dtype=jnp.float32)
    bias2 = jax.random.normal(k5, (o2,), dtype=jnp.float32)

    out2 = jax.block_until_ready(
        low_rank_linear(x2, U2, S2, V2, bias2, tb_max=128, tk_max=256))
    ref2 = low_rank_linear_ref(x2, U2, S2, V2, bias2)
    assert out2.shape == (b2, o2)
    assert _max_rel_err(out2, ref2) < 1e-2, "mismatch (fused tiled)"

    # --- two-stage fallback (used when out_features is too large for the fused
    #     output block); forced here at small size to verify correctness. ---
    out3 = jax.block_until_ready(
        low_rank_linear(x2, U2, S2, V2, bias2, tb_max=128, tk_max=256,
                        tn_max=128, force_two_stage=True))
    assert _max_rel_err(out3, ref2) < 1e-2, "mismatch (two-stage)"

    print("KERNEL_OK")
</pallas_src>

<mosaic_0001>
module attributes {stable_mosaic.version = 11 : i64} {
  func.func @kernel(%arg0: i32, %arg1: i32, %arg2: memref<8x32xf32, #tpu.memory_space<vmem>>, %arg3: memref<32x128xf32, #tpu.memory_space<vmem>>, %arg4: memref<128x16xf32, #tpu.memory_space<vmem>>, %arg5: memref<1x16xf32, #tpu.memory_space<vmem>>, %arg6: memref<8x16xf32, #tpu.memory_space<vmem>>) attributes {dimension_semantics = [#tpu.dimension_semantics<parallel>, #tpu.dimension_semantics<arbitrary>], iteration_bounds = array<i64: 1, 1>, scalar_prefetch = 0 : i64, scratch_operands = 0 : i64, tpu.core_type = #tpu.core_type<tc>, window_params = [{transform_indices = @transform_0, window_bounds = array<i64: 8, 32>}, {pipeline_mode = #tpu.pipeline_mode<synchronous>, transform_indices = @transform_1, window_bounds = array<i64: 32, 128>}, {pipeline_mode = #tpu.pipeline_mode<synchronous>, transform_indices = @transform_2, window_bounds = array<i64: 128, 16>}, {pipeline_mode = #tpu.pipeline_mode<synchronous>, transform_indices = @transform_3, window_bounds = array<i64: 1, 16>}, {transform_indices = @transform_4, window_bounds = array<i64: 8, 16>}]} {
    %c0 = arith.constant 0 : index
    %c0_0 = arith.constant 0 : index
    %0 = vector.load %arg2[%c0, %c0_0] : memref<8x32xf32, #tpu.memory_space<vmem>>, vector<8x32xf32>
    %c0_1 = arith.constant 0 : index
    %c0_2 = arith.constant 0 : index
    %1 = vector.load %arg3[%c0_1, %c0_2] : memref<32x128xf32, #tpu.memory_space<vmem>>, vector<32x128xf32>
    %cst = arith.constant dense<0.000000e+00> : vector<8x128xf32>
    %2 = tpu.matmul %0, %1, %cst {dimension_numbers = #tpu.dot_dimension_numbers<[1], [0], [0], [1], [0, 0, 1, 1], [], []>} : vector<8x32xf32>, vector<32x128xf32>, vector<8x128xf32> -> vector<8x128xf32>
    %c0_3 = arith.constant 0 : index
    %c0_4 = arith.constant 0 : index
    %3 = vector.load %arg4[%c0_3, %c0_4] : memref<128x16xf32, #tpu.memory_space<vmem>>, vector<128x16xf32>
    %cst_5 = arith.constant dense<0.000000e+00> : vector<8x16xf32>
    %4 = tpu.matmul %2, %3, %cst_5 {dimension_numbers = #tpu.dot_dimension_numbers<[1], [0], [0], [1], [0, 0, 1, 1], [], []>} : vector<8x128xf32>, vector<128x16xf32>, vector<8x16xf32> -> vector<8x16xf32>
    %c0_6 = arith.constant 0 : index
    %c0_7 = arith.constant 0 : index
    %5 = vector.load %arg5[%c0_6, %c0_7] : memref<1x16xf32, #tpu.memory_space<vmem>>, vector<1x16xf32>
    %6 = vector.broadcast %5 : vector<1x16xf32> to vector<8x16xf32>
    %7 = arith.addf %4, %6 : vector<8x16xf32>
    %c0_8 = arith.constant 0 : index
    %c0_9 = arith.constant 0 : index
    %8 = vector.load %arg6[%c0_8, %c0_9] : memref<8x16xf32, #tpu.memory_space<vmem>>, vector<8x16xf32>
    tpu.vector_store %arg6[%c0_8, %c0_9], %7 {strides = array<i32>} : memref<8x16xf32, #tpu.memory_space<vmem>>, vector<8x16xf32>,
    return
  }
  func.func @transform_0(%arg0: i32, %arg1: i32) -> (i32, i32) {
    %c0_i32 = arith.constant 0 : i32
    return %arg0, %arg1 : i32, i32
  }
  func.func @transform_1(%arg0: i32, %arg1: i32) -> (i32, i32) {
    %c0_i32 = arith.constant 0 : i32
    %c0_i32_0 = arith.constant 0 : i32
    %c0_i32_1 = arith.constant 0 : i32
    return %c0_i32, %c0_i32_0 : i32, i32
  }
  func.func @transform_2(%arg0: i32, %arg1: i32) -> (i32, i32) {
    %c0_i32 = arith.constant 0 : i32
    %c0_i32_0 = arith.constant 0 : i32
    %c0_i32_1 = arith.constant 0 : i32
    return %c0_i32, %c0_i32_0 : i32, i32
  }
  func.func @transform_3(%arg0: i32, %arg1: i32) -> (i32, i32) {
    %c0_i32 = arith.constant 0 : i32
    %c0_i32_0 = arith.constant 0 : i32
    %c0_i32_1 = arith.constant 0 : i32
    return %c0_i32, %c0_i32_0 : i32, i32
  }
  func.func @transform_4(%arg0: i32, %arg1: i32) -> (i32, i32) {
    %c0_i32 = arith.constant 0 : i32
    %c0_i32_0 = arith.constant 0 : i32
    return %arg0, %c0_i32 : i32, i32
  }
}

</mosaic_0001>

<bundles_post_ra>
// kernel: tpu_custom_call.1
= control target key start
LH: loop header
LB: loop body
LE: loop exit
PB: predicated region body
PF: predicated region fallthrough
CT: control target
= control target key end

     0   :  { %v301_v1 = vmov 0.0   ;;  %vm302_vm0 = vmmov 0   ;;  %vm23_vm1 = vcmask 261120   ;;  %s422_s0 = inlined_call_operand.vmem [shape: f32[8,32], index: 0, kind: input, shape index: {}]   ;;  %s423_s1 = inlined_call_operand.vmem [shape: f32[32,128], index: 1, kind: input, shape index: {}]   ;;  %s424_s2 = inlined_call_operand.vmem [shape: f32[128,16], index: 2, kind: input, shape index: {}]   ;;  %s425_s3 = inlined_call_operand.vmem [shape: f32[1,16], index: 3, kind: input, shape index: {}]   ;;  %s426_s4 = inlined_call_operand.hbm [shape: f32[8,16], index: 4, kind: output, shape index: {}]  }
   0x1   :  { %v22_v0 = vld [vmem:[%s423_s1 + $0x18] sm:$0xff]  ;;  %230 = vmatprep.subr.mxu0 %v301_v1  ;;  %v21_v2 = vld [vmem:[%s423_s1 + $0x10] sm:$0xff]  ;;  %238 = vmatprep.mubr.msk.f32.mxu0 %vm302_vm0, %v301_v1  ;;  %v20_v5 = vld [vmem:[%s423_s1 + $0x8] sm:$0xff] }
   0x2   :  { %v112_v3 = vld [vmem:[%s424_s2 + $0x78] sm:$0xff]  ;;  %231 = vmatpush3.msra.mxu0 %v22_v0  ;;  %241 = vmatprep.subr.mxu1 %v301_v1  ;;  %v111_v4 = vld [vmem:[%s424_s2 + $0x70] sm:$0xff]  ;;  %v110_v6 = vld [vmem:[%s424_s2 + $0x68] sm:$0xff] }
   0x3   :  { %232 = vmatprep.subr.mxu0 %v301_v1  ;;  %242 = vmatpush3.msra.mxu1 %v112_v3  ;;  %v19_v7 = vld [vmem:[%s423_s1] sm:$0xff] }
   0x4   :  { %233 = vmatpush3.msra.mxu0 %v21_v2  ;;  %243 = vmatprep.subr.mxu1 %v301_v1  ;;  %v18_v8 = vld [vmem:[%s422_s0] sm:$0xff] }
   0x5   :  { %234 = vmatprep.subr.mxu0 %v301_v1  ;;  %244 = vmatpush3.msra.mxu1 %v111_v4  ;;  %v109_v9 = vld [vmem:[%s424_s2 + $0x60] sm:$0xff] }
   0x6   :  { %235 = vmatpush3.msra.mxu0 %v20_v5  ;;  %245 = vmatprep.subr.mxu1 %v301_v1 }
   0x7   :  { %9 = vsyncpa [#allocation3], 0  ;;  %236 = vmatprep.subr.mxu0 %v301_v1  ;;  %246 = vmatpush3.msra.mxu1 %v110_v6  ;;  %v108_v10 = vld [vmem:[%s424_s2 + $0x58] sm:$0xff]  ;;  %v107_v11 = vld [vmem:[%s424_s2 + $0x50] sm:$0xff]  ;;  %s303_s5 = smov [#allocation2]   ;;  %vm190_vm2 = vcmask 130048  }
   0x8   :  { %237 = vmatpush3.msra.mxu0 %v19_v7  ;;  %247 = vmatprep.subr.mxu1 %v301_v1  ;;  %v106_v12 = vld [vmem:[%s424_s2 + $0x48] sm:$0xff]  ;;  %v105_v13 = vld [vmem:[%s424_s2 + $0x40] sm:$0xff]  ;;  %v104_v14 = vld [vmem:[%s424_s2 + $0x38] sm:$0xff]  ;;  %s198_s6 = sshll.u32 %s303_s5, 4  ;;  %s199_s6 = int_to_ptr.vmem [resolvable:$true] %s198_s6 }
   0x9   :  { %239 = vmatmul.mubr.msk.f32.vlgmr.msra.gmra.mxu0 %vm23_vm1, %v18_v8  ;;  %248 = vmatpush3.msra.mxu1 %v109_v9  ;;  %v103_v15 = vld [vmem:[%s424_s2 + $0x30] sm:$0xff]  ;;  %v102_v16 = vld [vmem:[%s424_s2 + $0x28] sm:$0xff]  ;;  %v101_v17 = vld [vmem:[%s424_s2 + $0x20] sm:$0xff]  ;;  %s279_s1 = scalar_lea.vmem %s199_s6, 128  ;;  %p284_p1 = scmp.lt.s32.totalorder %s199_s6, %s199_s6 }
   0xa   :  { %249 = vmatprep.subr.mxu1 %v301_v1  ;;  %273 = vmatprep.mubr.msk.f32.mxu1 %vm302_vm0, %v301_v1  ;;  %v100_v18 = vld [vmem:[%s424_s2 + $0x18] sm:$0xff]  ;;  %v99_v19 = vld [vmem:[%s424_s2 + $0x10] sm:$0xff]  ;;  %v98_v20 = vld [vmem:[%s424_s2 + $0x8] sm:$0xff]  ;;  %p280_p0 = scmp.ne.s32.totalorder %s199_s6, %s279_s1  ;;  %p285_p2 = scmp.lt.s32.totalorder %s279_s1, %s279_s1 }
   0xb   :  { %250 = vmatpush3.msra.mxu1 %v108_v10  ;;  %v97_v21 = vld [vmem:[%s424_s2] sm:$0xff] }
   0xc   :  { %251 = vmatprep.subr.mxu1 %v301_v1  ;;  %v207_v24 = vld [vmem:[%s425_s3] ss:$0 sm:$0xff]  ;;  %p286_p3 = por %p285_p2, %p284_p1 }
   0xd   :  { %252 = vmatpush3.msra.mxu1 %v107_v11 }
   0xe   :  { %253 = vmatprep.subr.mxu1 %v301_v1  ;;  %p287_p4 = pnand %p286_p3, %p280_p0 }
   0xf   :  { %254 = vmatpush3.msra.mxu1 %v106_v12 }
  0x10   :  { %255 = vmatprep.subr.mxu1 %v301_v1 }
  0x11   :  { %256 = vmatpush3.msra.mxu1 %v105_v13 }
  0x12   :  { %257 = vmatprep.subr.mxu1 %v301_v1 }
  0x13   :  { %258 = vmatpush3.msra.mxu1 %v104_v14 }
  0x14   :  { %259 = vmatprep.subr.mxu1 %v301_v1 }
  0x15   :  { %260 = vmatpush3.msra.mxu1 %v103_v15 }
  0x16   :  { %261 = vmatprep.subr.mxu1 %v301_v1 }
  0x17   :  { %262 = vmatpush3.msra.mxu1 %v102_v16 }
  0x18   :  { %263 = vmatprep.subr.mxu1 %v301_v1 }
  0x19   :  { %264 = vmatpush3.msra.mxu1 %v101_v17 }
  0x1a   :  { %265 = vmatprep.subr.mxu1 %v301_v1 }
  0x1b   :  { %266 = vmatpush3.msra.mxu1 %v100_v18 }
  0x1c   :  { %267 = vmatprep.subr.mxu1 %v301_v1 }
  0x1d   :  { %268 = vmatpush3.msra.mxu1 %v99_v19 }
  0x1e   :  { %269 = vmatprep.subr.mxu1 %v301_v1 }
  0x1f   :  { %270 = vmatpush3.msra.mxu1 %v98_v20 }
  0x20   :  { %271 = vmatprep.subr.mxu1 %v301_v1 }
  0x21   :  { %272 = vmatpush3.msra.mxu1 %v97_v21 }
  0xc9   :  { %v93_v22 = vpop.f32.mrf.mxu0 }
  0xca   :  { %274 = vmatmul.mubr.f32.vlgmr.msra.gmra.mxu1 %v93_v22 }
  0xcb   :  { %v240_v23 = vpop.f32.mrf.mxu0 }
 0x18a   :  { %v186_v25 = vpop.f32.mrf.mxu1 }
 0x18b   :  { %v187_v26 = vadd.f32 %v207_v24, %v186_v25 }
 0x18c   :  { %v275_v27 = vpop.f32.mrf.mxu1 }
 0x18d   :  { %191 = vst.msk [vmem:[#allocation2] sm:$0xff] %vm190_vm2, %v187_v26 }
 0x18e   :  { %290 = shalt.err (!%p287_p4)
}
 0x18f   :  { %201 = dma.vmem_to_hbm [thread:$0]  %s199_s6, 128, %s426_s4, [#allocation3]  }
 0x190   :  { %299 = dma.done.wait [#allocation3], 128  }
 0x191   :  { %300 = vsyncadd [#allocation3], 4294967168 }
 0x192   :  { %205 = vsyncpa [#allocation3], 1 }

</bundles_post_ra>
